<compile_context>
chip_gen: v6e
topology: v6e:2x2x1
jax: 0.10.0
libtpu: 0.0.40
codegen_flags: <defaults>
</compile_context>

<pallas_src>
import jax
import jax.numpy as jnp
from jax import lax
from jax.experimental import pallas as pl
from jax.experimental.pallas import tpu as pltpu


def _make_sumsq_kernel(n_rows, b, tile_rows, steps_per_core, needs_mask):
    """Builds the streaming sum-of-squares kernel for a (cores, steps) grid.

    x_ref   : (tile_rows, b) input tile (any float dtype)
    out_ref : (1, 8, 128) f32 per-core partial-sum block (all lanes = partial)
    acc_ref : (1, b) f32 VMEM accumulator (per core)
    """

    def kernel(x_ref, out_ref, acc_ref):
        p = pl.program_id(0)
        s = pl.program_id(1)

        @pl.when(s == 0)
        def _():
            acc_ref[...] = jnp.zeros_like(acc_ref)

        x = x_ref[...].astype(jnp.float32)
        if needs_mask:
            # Only emitted when the last row-block overruns N; zeros are exact
            # for a sum of squares.
            row_start = (p * steps_per_core + s) * tile_rows
            rows = row_start + lax.broadcasted_iota(jnp.int32, (tile_rows, b), 0)
            x = jnp.where(rows < n_rows, x, 0.0)

        # One square + one axis-0 fold per step; only a (1, b) partial is
        # written back to VMEM (keeps v5e's single vector-store slot free for
        # the DMA-fed pipeline).
        acc_ref[...] += jnp.sum(x * x, axis=0, keepdims=True)

        @pl.when(s == pl.num_programs(1) - 1)
        def _():
            # Single tiny cross-lane reduce per core, once, in the epilogue.
            out_ref[...] = jnp.zeros_like(out_ref) + jnp.sum(acc_ref[...])

    return kernel


def approx_cde_loss(beta, shrink_factor=1.0, *, tile_rows=None, num_cores=None,
                    target_tile_bytes=None):
    """Pallas implementation of approx_cde_loss.forward. Returns scalar f32."""
    assert beta.ndim == 2, "beta must be (N, B)"
    n, b = beta.shape
    itemsize = jnp.dtype(beta.dtype).itemsize

    # Device-generation-aware defaults.
    kind = getattr(jax.devices()[0], "device_kind", "").lower()
    is_v7 = "v7" in kind
    if num_cores is None:
        num_cores = 2 if is_v7 else 1          # 2 TCs only on v7x
    if target_tile_bytes is None:
        if is_v7:
            target_tile_bytes = 8 << 20        # 3.2 TB/s HBM: amortize step overhead
        elif "v6" in kind:
            target_tile_bytes = 4 << 20
        else:
            target_tile_bytes = 2 << 20        # v5e / unknown

    # Size tiles by VMEM block footprint (lane-padded), not element counts.
    lane_pad = ((b + 127) // 128) * 128
    row_vmem_bytes = lane_pad * itemsize
    if tile_rows is None:
        budget = min(target_tile_bytes, 12 << 20)   # 2x double-buffer < 32 MiB scoped
        tile_rows = max(1, budget // row_vmem_bytes)
    # Multiple of 32 rows keeps the sublane tiling legal for f32 / bf16 / int8.
    tile_rows = max(32, (int(tile_rows) // 32) * 32)
    tile_rows = min(tile_rows, ((n + 31) // 32) * 32)

    if tile_rows >= n:
        # Single block covering the whole array: use exact dims, no masking.
        tile_rows = n
        total_steps = 1
    else:
        total_steps = (n + tile_rows - 1) // tile_rows

    # Split across cores only when the step count divides evenly so every core
    # has real work and no block is fully out of range.
    cores = num_cores if (num_cores > 1 and total_steps % num_cores == 0) else 1
    steps = total_steps // cores
    needs_mask = (total_steps * tile_rows != n)

    vmem_limit = max(32 << 20, 2 * tile_rows * row_vmem_bytes + (4 << 20))
    vmem_limit = min(vmem_limit, (56 << 20) if is_v7 else (100 << 20))

    kernel = _make_sumsq_kernel(n, b, tile_rows, steps, needs_mask)

    out = pl.pallas_call(
        kernel,
        out_shape=jax.ShapeDtypeStruct((cores, 8, 128), jnp.float32),
        grid_spec=pltpu.PrefetchScalarGridSpec(
            num_scalar_prefetch=0,
            grid=(cores, steps),
            in_specs=[
                pl.BlockSpec((tile_rows, b), lambda p, s: (p * steps + s, 0)),
            ],
            out_specs=pl.BlockSpec((1, 8, 128), lambda p, s: (p, 0, 0)),
            scratch_shapes=[pltpu.VMEM((1, b), jnp.float32)],
        ),
        compiler_params=pltpu.CompilerParams(
            dimension_semantics=("parallel", "arbitrary"),
            vmem_limit_bytes=int(vmem_limit),
        ),
    )(beta)

    total = jnp.sum(out[:, 0, 0])
    # Constant epilogue (negate, +1, /N, /shrink) folded out of the kernel loop.
    loss = -(total / jnp.float32(n) + 1.0) / jnp.asarray(shrink_factor, jnp.float32)
    return loss.astype(jnp.float32)


def _reference_loss(beta, shrink_factor=1.0):
    complexity = jnp.sum(jnp.asarray(beta, jnp.float32) ** 2, axis=1) + 1.0
    return jnp.mean(-complexity) / jnp.float32(shrink_factor)


if __name__ == "__main__":
    key = jax.random.PRNGKey(0)
    k1, k2, k3 = jax.random.split(key, 3)
    shrink_factor = 2.0

    # Case 1: small CDE head shape, single exact-dims block, no masking.
    N1, B1 = 16, 31
    beta1 = jax.random.normal(k1, (N1, B1), dtype=jnp.float32)
    loss1 = jax.block_until_ready(approx_cde_loss(beta1, shrink_factor))
    ref1 = _reference_loss(beta1, shrink_factor)
    assert jnp.allclose(loss1, ref1, rtol=1e-5, atol=1e-4), (loss1, ref1)

    # Case 2: multi-step grid with a 2-way "parallel" core split (sequential
    # on single-TC chips), no tail masking.
    N2, B2 = 64, 256
    beta2 = jax.random.normal(k2, (N2, B2), dtype=jnp.float32)
    loss2 = jax.block_until_ready(
        approx_cde_loss(beta2, shrink_factor, tile_rows=32, num_cores=2))
    ref2 = _reference_loss(beta2, shrink_factor)
    assert jnp.allclose(loss2, ref2, rtol=1e-5, atol=1e-4), (loss2, ref2)

    # Case 3: ragged row tail (in-kernel iota mask) + bf16 input cast path.
    N3, B3 = 45, 31
    beta3 = jax.random.normal(k3, (N3, B3), dtype=jnp.float32).astype(jnp.bfloat16)
    loss3 = jax.block_until_ready(
        approx_cde_loss(beta3, shrink_factor, tile_rows=32))
    ref3 = _reference_loss(beta3, shrink_factor)
    assert jnp.allclose(loss3, ref3, rtol=1e-5, atol=1e-4), (loss3, ref3)

    print("KERNEL_OK")
</pallas_src>

<mosaic_0001>
module attributes {stable_mosaic.version = 11 : i64} {
  func.func @kernel(%arg0: i32, %arg1: i32, %arg2: memref<16x31xf32, #tpu.memory_space<vmem>>, %arg3: memref<1x8x128xf32, #tpu.memory_space<vmem>>, %arg4: memref<1x31xf32, #tpu.memory_space<vmem>>) attributes {dimension_semantics = [#tpu.dimension_semantics<parallel>, #tpu.dimension_semantics<arbitrary>], iteration_bounds = array<i64: 1, 1>, scalar_prefetch = 0 : i64, scratch_operands = 1 : i64, tpu.core_type = #tpu.core_type<tc>, window_params = [{transform_indices = @transform_0, window_bounds = array<i64: 16, 31>}, {transform_indices = @transform_1, window_bounds = array<i64: 1, 8, 128>}]} {
    %c0_i32 = arith.constant 0 : i32
    %0 = arith.cmpi eq, %arg1, %c0_i32 : i32
    %1 = arith.extui %0 : i1 to i32
    %c0_i32_0 = arith.constant 0 : i32
    %2 = arith.cmpi ne, %1, %c0_i32_0 : i32
    scf.if %2 {
      %cst_8 = arith.constant 0.000000e+00 : f32
      %13 = vector.broadcast %cst_8 : f32 to vector<1x31xf32>
      %c0_9 = arith.constant 0 : index
      %c0_10 = arith.constant 0 : index
      %14 = vector.load %arg4[%c0_9, %c0_10] : memref<1x31xf32, #tpu.memory_space<vmem>>, vector<1x31xf32>
      tpu.vector_store %arg4[%c0_9, %c0_10], %13 {strides = array<i32>} : memref<1x31xf32, #tpu.memory_space<vmem>>, vector<1x31xf32>,
    } else {
    }
    %c0 = arith.constant 0 : index
    %c0_1 = arith.constant 0 : index
    %3 = vector.load %arg2[%c0, %c0_1] : memref<16x31xf32, #tpu.memory_space<vmem>>, vector<16x31xf32>
    %c0_2 = arith.constant 0 : index
    %c0_3 = arith.constant 0 : index
    %4 = vector.load %arg4[%c0_2, %c0_3] : memref<1x31xf32, #tpu.memory_space<vmem>>, vector<1x31xf32>
    %5 = arith.mulf %3, %3 : vector<16x31xf32>
    %cst = arith.constant dense<0.000000e+00> : vector<31xf32>
    %6 = vector.multi_reduction <add>, %5, %cst [0] : vector<16x31xf32> to vector<31xf32>
    %7 = vector.shape_cast %6 : vector<31xf32> to vector<1x31xf32>
    %8 = arith.addf %4, %7 : vector<1x31xf32>
    %c0_4 = arith.constant 0 : index
    %c0_5 = arith.constant 0 : index
    %9 = vector.load %arg4[%c0_4, %c0_5] : memref<1x31xf32, #tpu.memory_space<vmem>>, vector<1x31xf32>
    tpu.vector_store %arg4[%c0_4, %c0_5], %8 {strides = array<i32>} : memref<1x31xf32, #tpu.memory_space<vmem>>, vector<1x31xf32>,
    %c0_i32_6 = arith.constant 0 : i32
    %10 = arith.cmpi eq, %arg1, %c0_i32_6 : i32
    %11 = arith.extui %10 : i1 to i32
    %c0_i32_7 = arith.constant 0 : i32
    %12 = arith.cmpi ne, %11, %c0_i32_7 : i32
    scf.if %12 {
      %cst_8 = arith.constant 0.000000e+00 : f32
      %13 = vector.broadcast %cst_8 : f32 to vector<1x8x128xf32>
      %c0_9 = arith.constant 0 : index
      %c0_10 = arith.constant 0 : index
      %14 = vector.load %arg4[%c0_9, %c0_10] : memref<1x31xf32, #tpu.memory_space<vmem>>, vector<1x31xf32>
      %15 = vector.shape_cast %14 : vector<1x31xf32> to vector<1x1x31xf32>
      %cst_11 = arith.constant dense<0.000000e+00> : vector<1xf32>
      %16 = vector.multi_reduction <add>, %15, %cst_11 [1, 2] : vector<1x1x31xf32> to vector<1xf32>
      %17 = vector.shape_cast %16 : vector<1xf32> to vector<1x1x1xf32>
      %18 = vector.extract %17[0, 0, 0] : f32 from vector<1x1x1xf32>
      %19 = vector.broadcast %18 : f32 to vector<1x8x128xf32>
      %20 = arith.addf %13, %19 : vector<1x8x128xf32>
      %c0_12 = arith.constant 0 : index
      %c0_13 = arith.constant 0 : index
      %c0_14 = arith.constant 0 : index
      %21 = vector.load %arg3[%c0_12, %c0_13, %c0_14] : memref<1x8x128xf32, #tpu.memory_space<vmem>>, vector<1x8x128xf32>
      tpu.vector_store %arg3[%c0_12, %c0_13, %c0_14], %20 {strides = array<i32>} : memref<1x8x128xf32, #tpu.memory_space<vmem>>, vector<1x8x128xf32>,
    } else {
    }
    return
  }
  func.func @transform_0(%arg0: i32, %arg1: i32) -> (i32, i32) {
    %c1_i32 = arith.constant 1 : i32
    %0 = arith.muli %arg0, %c1_i32 : i32
    %1 = arith.addi %0, %arg1 : i32
    %c0_i32 = arith.constant 0 : i32
    %c0_i32_0 = arith.constant 0 : i32
    return %1, %c0_i32 : i32, i32
  }
  func.func @transform_1(%arg0: i32, %arg1: i32) -> (i32, i32, i32) {
    %c0_i32 = arith.constant 0 : i32
    %c0_i32_0 = arith.constant 0 : i32
    %c0_i32_1 = arith.constant 0 : i32
    return %arg0, %c0_i32, %c0_i32_0 : i32, i32, i32
  }
}

</mosaic_0001>

<bundles_post_ra>
// kernel: tpu_custom_call.1
= control target key start
LH: loop header
LB: loop body
LE: loop exit
PB: predicated region body
PF: predicated region fallthrough
CT: control target
= control target key end

     0   :  { %6 = vsyncpa [#allocation4], 0  ;;  %s160_s0 = inlined_call_operand.hbm [shape: f32[16,31], index: 0, kind: input, shape index: {}]   ;;  %s161_s1 = inlined_call_operand.hbm [shape: f32[1,8,128], index: 1, kind: output, shape index: {}]  }
   0x1   :  { %7 = vsyncpa [#allocation5], 0  ;;  %s136_s6 = smov [#allocation3]  }
   0x2   :  { %s17_s7 = sshll.u32 %s136_s6, 4  ;;  %s18_s7 = int_to_ptr.vmem [resolvable:$true] %s17_s7 }
   0x3   :  { %s100_s8 = scalar_lea.vmem %s18_s7, 256  ;;  %p105_p1 = scmp.lt.s32.totalorder %s18_s7, %s18_s7 }
   0x4   :  { %p101_p0 = scmp.ne.s32.totalorder %s18_s7, %s100_s8  ;;  %p106_p2 = scmp.lt.s32.totalorder %s100_s8, %s100_s8 }
   0x6   :  { %p107_p3 = por %p106_p2, %p105_p1 }
   0x8   :  { %p108_p4 = pnand %p107_p3, %p101_p0 }
   0xa   :  { %111 = shalt.err (!%p108_p4)
}
   0xb   :  { %s137_s9 = smov 128   ;;  %s138_s10 = smov 8  }
   0xc   :  { %23 = dma.hbm_to_vmem [thread:$0]  %s160_s0, 256, %s18_s7, [#allocation4], %s137_s9, %s137_s9, %s138_s10  }
   0xd   :  { %132 = dma.done.wait [#allocation4], 256  }
   0xe   :  { %133 = vsyncadd [#allocation4], 4294967040  ;;  %vm33_vm0 = vcmask 245760   ;;  %v139_v0 = vmov 0.0   ;;  %v35_v1 = vld [vmem:[#allocation3] sm:$0xff]  ;;  %v36_v2 = vld [vmem:[#allocation3 + $0x8] sm:$0xff] }
   0xf   :  { %34 = vst.msk [vmem:[#allocation2] sm:$0x1] %vm33_vm0, %v139_v0  ;;  %vm40_vm1 = vcmask 252928   ;;  %v38_v3 = vmul.f32 %v35_v1, %v35_v1  ;;  %v39_v4 = vmul.f32 %v36_v2, %v36_v2  ;;  %s140_s0 = smov [#allocation6]  }
  0x10   :  { %s76_s13 = sshll.u32 %s140_s0, 4  ;;  %s77_s13 = int_to_ptr.vmem [resolvable:$true] %s76_s13 }
  0x11   :  { %v41_v5 = vsel %vm40_vm1, %v38_v3, 0.0  ;;  %v42_v6 = vsel %vm40_vm1, %v39_v4, 0.0  ;;  %s112_s15 = scalar_lea.vmem %s77_s13, 128  ;;  %p117_p6 = scmp.lt.s32.totalorder %s77_s13, %s77_s13 }
  0x12   :  { %v43_v7 = vadd.f32 %v42_v6, %v41_v5  ;;  %p113_p5 = scmp.ne.s32.totalorder %s77_s13, %s112_s15  ;;  %p118_p7 = scmp.lt.s32.totalorder %s112_s15, %s112_s15 }
  0x14   :  { %v44_v8 = vrot.slane %v43_v7, 4  ;;  %p119_p8 = por %p118_p7, %p117_p6 }
  0x16   :  { %v45_v9 = vadd.f32 %v44_v8, %v43_v7  ;;  %v37_v13 = vld [vmem:[#allocation2] sm:$0x1]  ;;  %p120_p9 = pnand %p119_p8, %p113_p5 }
  0x18   :  { %v46_v10 = vrot.slane %v45_v9, 2 }
  0x1a   :  { %v47_v11 = vadd.f32 %v46_v10, %v45_v9 }
  0x1c   :  { %v48_v12 = vrot.slane %v47_v11, 1 }
  0x1e   :  { %v49_v14 = vadd.f32 %v48_v12, %v47_v11 }
  0x20   :  { %v50_v15 = vadd.f32 %v49_v14, %v37_v13 }
  0x22   :  { %52 = vst.msk [vmem:[#allocation2] sm:$0x1] %vm33_vm0, %v50_v15 }
  0x29   :  { %v56_v16 = vld [vmem:[#allocation2] sm:$0x1] }
  0x2a   :  { %v57_v17 = vsel %vm33_vm0, %v56_v16, 0.0 }
  0x2b   :  { %58 = vadd.xlane.f32.xlu0 %v57_v17 }
  0xb4   :  { %v59_v18 = vpop.xlane.xlu0 %58 }
  0xb5   :  { %v60_v19 = vrot.slane %v59_v18, 4 }
  0xb7   :  { %v61_v20 = vadd.f32 %v60_v19, %v59_v18 }
  0xb9   :  { %v62_v21 = vrot.slane %v61_v20, 2 }
  0xbb   :  { %v63_v22 = vadd.f32 %v62_v21, %v61_v20 }
  0xbd   :  { %v64_v23 = vrot.slane %v63_v22, 1 }
  0xbf   :  { %v65_v24 = vadd.f32 %v64_v23, %v63_v22 }
  0xc1   :  { %85 = vpush %v65_v24 }
  0xf2   :  { %s86_s14 = spop %85 }
  0xf3   :  { %v67_v25 = vstv %s86_s14 }
  0xf4   :  { %69 = vst [vmem:[#allocation6] sm:$0xff] %v67_v25 }
  0xf5   :  { %123 = shalt.err (!%p120_p9)
}
  0xf6   :  { %79 = dma.vmem_to_hbm [thread:$0]  %s77_s13, 128, %s161_s1, [#allocation5]  }
  0xf7   :  { %134 = dma.done.wait [#allocation5], 128  }
  0xf8   :  { %135 = vsyncadd [#allocation5], 4294967168 }
  0xf9   :  { %83 = vsyncpa [#allocation4], 1 }
  0xfa   :  { %84 = vsyncpa [#allocation5], 1 }

</bundles_post_ra>
